<compile_context>
chip_gen: v7x
topology: tpu7x:2x2x1
jax: 0.10.0
libtpu: 0.0.40
codegen_flags: <defaults>
</compile_context>

<pallas_src>
import jax
import jax.numpy as jnp
from jax.experimental import pallas as pl
from jax.experimental.pallas import tpu as pltpu


# Lane-dense slab: last dim is a multiple of 128 -> unmasked vst (full store slot).
_LANES = 512
# 512 x 512 u32 = 1 MiB per block; in+out double-buffered ~= 4 MiB VMEM,
# comfortably inside v5e/v6e (128 MiB) and v7x (64 MiB) while still large
# enough to sit near the measured HBM-roofline sweet spot (>=512 tiles).
_MAX_TILE_ROWS = 512


def _copy_kernel(x_ref, o_ref):
    # Straight vld -> vst per vreg; no extra elementwise work (store-slot /
    # HBM-bandwidth bound on all generations).
    o_ref[...] = x_ref[...]


def _batched_pallas_copy_u32(slab: jax.Array) -> jax.Array:
    """One tiled, pipelined Pallas launch copying a lane-dense uint32 slab."""
    rows, lanes = slab.shape
    assert lanes == _LANES and rows % 8 == 0
    tile_rows = _MAX_TILE_ROWS if rows >= _MAX_TILE_ROWS else rows
    assert rows % tile_rows == 0
    grid = (rows // tile_rows,)
    return pl.pallas_call(
        _copy_kernel,
        out_shape=jax.ShapeDtypeStruct(slab.shape, slab.dtype),
        grid=grid,
        in_specs=[pl.BlockSpec((tile_rows, _LANES), lambda i: (i, 0))],
        out_specs=pl.BlockSpec((tile_rows, _LANES), lambda i: (i, 0)),
        compiler_params=pltpu.CompilerParams(
            dimension_semantics=("parallel",),
        ),
    )(slab)


def _pack_u32(tensors):
    """Pack every 32-bit tensor's bits into one lane-dense [rows, 512] u32 slab."""
    metas, parts, passthrough = [], [], {}
    off = 0
    for k, v in tensors.items():
        if v.dtype.itemsize != 4:
            # TODO(synk): sub-32-bit dtypes (bf16/int8/bool) are passed through
            # untouched (still an exact identity); packing them would need
            # byte-level repacking into the 32-bit container.
            passthrough[k] = v
            continue
        flat = jax.lax.bitcast_convert_type(v, jnp.uint32).reshape(-1)
        metas.append((k, v.shape, v.dtype, off, flat.size))
        parts.append(flat)
        off += flat.size
    if not parts:
        return None, metas, passthrough

    u32 = parts[0] if len(parts) == 1 else jnp.concatenate(parts)
    n = u32.size
    rows = pl.cdiv(n, _LANES)
    # Tile height: 512 for big slabs, otherwise the whole slab rounded up to a
    # multiple of 8 sublanes (block dims must be (8,128)-aligned or full-extent).
    tile_rows = _MAX_TILE_ROWS if rows >= _MAX_TILE_ROWS else ((rows + 7) // 8) * 8
    rows_pad = pl.cdiv(rows, tile_rows) * tile_rows
    pad = rows_pad * _LANES - n
    if pad:
        u32 = jnp.pad(u32, (0, pad))
    return u32.reshape(rows_pad, _LANES), metas, passthrough


def _unpack_u32(slab, metas, passthrough):
    out = dict(passthrough)
    flat = slab.reshape(-1)
    for k, shape, dtype, off, n in metas:
        out[k] = jax.lax.bitcast_convert_type(flat[off:off + n], dtype).reshape(shape)
    return out


class BaseModulePallas:
    """JAX/Pallas equivalent of dlk BaseModule.

    No parameters: BaseModule.__init__ only (optionally) registers a
    'logits_gather' sub-module, which is absent in this synthetic config.
    """

    def __init__(self, materialize_copy: bool = False):
        self._logits_gather = None          # no logits_gather module configured
        self._materialize_copy = materialize_copy

    def forward(self, inputs):
        # Abstract in PyTorch; observable dataflow here is an identity over the dict.
        if not self._materialize_copy:
            # Fast path: an identity needs zero FLOPs and zero bytes moved --
            # no kernel launch, no HBM round trip.
            return inputs
        if not inputs:
            return inputs
        # Materializing path: one batched, lane-dense, tiled Pallas copy for
        # the whole dict (amortizes launch overhead across all entries).
        slab, metas, passthrough = _pack_u32(inputs)
        if slab is None:
            return dict(passthrough)
        slab = _batched_pallas_copy_u32(slab)
        return _unpack_u32(slab, metas, passthrough)

    def forward_logits_gather(self, inputs):
        inputs = self.forward(inputs)
        if self._logits_gather is not None:
            inputs = self._logits_gather(inputs)
        return inputs

    # IModuleStep-style steps all route through forward_logits_gather.
    def predict_step(self, inputs):
        return self.forward_logits_gather(inputs)

    def training_step(self, inputs):
        return self.forward_logits_gather(inputs)

    def validation_step(self, inputs):
        return self.forward_logits_gather(inputs)

    def test_step(self, inputs):
        return self.validation_step(inputs)


if __name__ == "__main__":
    key = jax.random.PRNGKey(0)
    k1, k2 = jax.random.split(key)

    # Small mini-batch dict: batch=2, seq=8, hidden=32; plus an int mask tensor.
    inputs = {
        "logits": jax.random.normal(k1, (2, 8, 32), dtype=jnp.float32),
        "attention_mask": (jax.random.uniform(k2, (2, 8)) > 0.3).astype(jnp.int32),
    }

    # 1) Default path: pure identity, zero kernel launches (the recommended mode).
    fast_module = BaseModulePallas()
    out_fast = jax.block_until_ready(fast_module.predict_step(inputs))

    # 2) Materializing path: single batched lane-dense tiled Pallas copy launch.
    copy_module = BaseModulePallas(materialize_copy=True)
    out_copy = jax.block_until_ready(copy_module.predict_step(inputs))

    # Verify exact pass-through semantics on both paths.
    for k in inputs:
        for out in (out_fast, out_copy):
            assert out[k].shape == inputs[k].shape, (k, out[k].shape)
            assert out[k].dtype == inputs[k].dtype, (k, out[k].dtype)
            assert bool(jnp.all(out[k] == inputs[k])), k

    print("KERNEL_OK")
</pallas_src>

<mosaic_0001>
module attributes {stable_mosaic.version = 11 : i64} {
  func.func @_copy_kernel(%arg0: i32, %arg1: memref<8x512xi32, #tpu.memory_space<vmem>>, %arg2: memref<8x512xi32, #tpu.memory_space<vmem>>) attributes {dimension_semantics = [#tpu.dimension_semantics<parallel>], iteration_bounds = array<i64: 1>, scalar_prefetch = 0 : i64, scratch_operands = 0 : i64, tpu.core_type = #tpu.core_type<tc>, window_params = [{transform_indices = @transform_0, window_bounds = array<i64: 8, 512>}, {transform_indices = @transform_1, window_bounds = array<i64: 8, 512>}]} {
    %c0 = arith.constant 0 : index
    %c0_0 = arith.constant 0 : index
    %0 = vector.load %arg1[%c0, %c0_0] : memref<8x512xi32, #tpu.memory_space<vmem>>, vector<8x512xi32>
    %c0_1 = arith.constant 0 : index
    %c0_2 = arith.constant 0 : index
    %1 = vector.load %arg2[%c0_1, %c0_2] : memref<8x512xi32, #tpu.memory_space<vmem>>, vector<8x512xi32>
    tpu.vector_store %arg2[%c0_1, %c0_2], %0 {strides = array<i32>} : memref<8x512xi32, #tpu.memory_space<vmem>>, vector<8x512xi32>,
    return
  }
  func.func @transform_0(%arg0: i32) -> (i32, i32) {
    %c0_i32 = arith.constant 0 : i32
    %c0_i32_0 = arith.constant 0 : i32
    return %arg0, %c0_i32 : i32, i32
  }
  func.func @transform_1(%arg0: i32) -> (i32, i32) {
    %c0_i32 = arith.constant 0 : i32
    %c0_i32_0 = arith.constant 0 : i32
    return %arg0, %c0_i32 : i32, i32
  }
}

</mosaic_0001>

<bundles_post_ra>
// kernel: tpu_custom_call.1
= control target key start
LH: loop header
LB: loop body
LE: loop exit
PB: predicated region body
PF: predicated region fallthrough
CT: control target
= control target key end

     0   :  { %6 = vsyncpa [#allocation3], 0  ;;  %s130_s0 = inlined_call_operand.hbm [shape: u32[8,512], index: 0, kind: input, shape index: {}]   ;;  %s131_s1 = inlined_call_operand.hbm [shape: u32[8,512], index: 1, kind: output, shape index: {}]  }
   0x1   :  { %7 = vsyncpa [#allocation4], 0  ;;  %s94_s6 = smov [#allocation2]   ;;  %s46_s10 = scalar_lea.hbm %s130_s0, 512 }
   0x2   :  { %s14_s7 = sshll.u32 %s94_s6, 4  ;;  %p47_p0 = scmp.ne.s32.totalorder %s130_s0, %s46_s10  ;;  %s15_s7 = int_to_ptr.vmem [resolvable:$true] %s14_s7 }
   0x3   :  { %p50_p1 = scmp.lt.u32.totalorder %s46_s10, %s130_s0 }
   0x5   :  { %p52_p2 = pnand %p50_p1, %p47_p0 }
   0x7   :  { %55 = shalt.err (!%p52_p2)
}
   0x8   :  { %s56_s15 = scalar_lea.vmem %s15_s7, 512  ;;  %p61_p4 = scmp.lt.s32.totalorder %s15_s7, %s15_s7 }
   0x9   :  { %p57_p3 = scmp.ne.s32.totalorder %s15_s7, %s56_s15  ;;  %p62_p5 = scmp.lt.s32.totalorder %s56_s15, %s56_s15 }
   0xb   :  { %p63_p6 = por %p62_p5, %p61_p4 }
   0xd   :  { %p64_p7 = pnand %p63_p6, %p57_p3 }
   0xf   :  { %67 = shalt.err (!%p64_p7)
}
  0x10   :  { %17 = dma.hbm_to_vmem [thread:$0]  %s130_s0, 512, %s15_s7, [#allocation3]  }
  0x11   :  { %90 = dma.done.wait [#allocation3], 512  }
  0x12   :  { %91 = vsyncadd [#allocation3], 4294966784  ;;  %s95_s18 = smov [#allocation5]   ;;  %v21_v0 = vld [vmem:[#allocation2] sm:$0xff]  ;;  %v22_v1 = vld [vmem:[#allocation2 + $0x8] sm:$0xff] }
  0x13   :  { %s35_s19 = sshll.u32 %s95_s18, 4  ;;  %v23_v2 = vld [vmem:[#allocation2 + $0x10] sm:$0xff]  ;;  %25 = vst [vmem:[#allocation5] sm:$0xff] %v21_v0  ;;  %26 = vst [vmem:[#allocation5 + $0x8] sm:$0xff] %v22_v1  ;;  %v24_v3 = vld [vmem:[#allocation2 + $0x18] sm:$0xff]  ;;  %s36_s19 = int_to_ptr.vmem [resolvable:$true] %s35_s19 }
  0x14   :  { %27 = vst [vmem:[#allocation5 + $0x10] sm:$0xff] %v23_v2  ;;  %28 = vst [vmem:[#allocation5 + $0x18] sm:$0xff] %v24_v3  ;;  %s68_s20 = scalar_lea.vmem %s36_s19, 512  ;;  %p73_p9 = scmp.lt.s32.totalorder %s36_s19, %s36_s19 }
  0x15   :  { %p69_p8 = scmp.ne.s32.totalorder %s36_s19, %s68_s20  ;;  %p74_p10 = scmp.lt.s32.totalorder %s68_s20, %s68_s20 }
  0x17   :  { %p75_p11 = por %p74_p10, %p73_p9 }
  0x19   :  { %p76_p12 = pnand %p75_p11, %p69_p8 }
  0x1b   :  { %79 = shalt.err (!%p76_p12)
}
  0x1c   :  { %s80_s22 = scalar_lea.hbm %s131_s1, 512 }
  0x1d   :  { %p81_p13 = scmp.ne.s32.totalorder %s131_s1, %s80_s22  ;;  %p84_p0 = scmp.lt.u32.totalorder %s80_s22, %s131_s1 }
  0x1f   :  { %p86_p1 = pnand %p84_p0, %p81_p13 }
  0x21   :  { %89 = shalt.err (!%p86_p1)
}
  0x22   :  { %38 = dma.vmem_to_hbm [thread:$0]  %s36_s19, 512, %s131_s1, [#allocation4]  }
  0x23   :  { %92 = dma.done.wait [#allocation4], 512  }
  0x24   :  { %93 = vsyncadd [#allocation4], 4294966784 }
  0x25   :  { %42 = vsyncpa [#allocation3], 1 }
  0x26   :  { %43 = vsyncpa [#allocation4], 1 }

</bundles_post_ra>
